<compile_context>
chip_gen: v5e
topology: v5e:2x2
jax: 0.10.0
libtpu: 0.0.40
codegen_flags: <defaults>
</compile_context>

<pallas_src>
import functools
import math

import jax
import jax.numpy as jnp
import numpy as np
from jax.experimental import pallas as pl
from jax.experimental.pallas import tpu as pltpu


def _disen_gat_kernel(feat_ref, typ_ref, dep_ref, asp_ref, mask_ref,
                      wk_ref, wv_ref, wq_ref, bk_ref, bv_ref, bq_ref,
                      chw_ref, out_ref, *, n_nodes, ba_tile):
    N = n_nodes
    T = ba_tile
    D = feat_ref.shape[-1]
    H = wq_ref.shape[-1]

    # ---- fused projections on the MXU (f32 accumulation) ----------------
    feat2 = feat_ref[...].reshape(T * N, D)
    typ2 = typ_ref[...].reshape(T * N, D)
    dep2 = dep_ref[...].reshape(T * N, D)

    # Keys for [feature; type; dep] in one matmul.
    k_all = jnp.dot(jnp.concatenate([feat2, typ2, dep2], axis=0), wk_ref[...],
                    preferred_element_type=jnp.float32) + bk_ref[...]   # (3TN, H)
    # Values for [feature; type] in one matmul.
    v_all = jnp.dot(jnp.concatenate([feat2, typ2], axis=0), wv_ref[...],
                    preferred_element_type=jnp.float32) + bv_ref[...]   # (2TN, H)

    k_f = k_all[0 * T * N:1 * T * N].reshape(T, N, H)   # W_K
    k_t = k_all[1 * T * N:2 * T * N].reshape(T, N, H)   # T_K
    k_d = k_all[2 * T * N:3 * T * N].reshape(T, N, H)   # DW_K
    v_f = v_all[0 * T * N:1 * T * N].reshape(T, N, H)   # W_V
    v_t = v_all[1 * T * N:2 * T * N].reshape(T, N, H)   # T_V

    # Query (AS_Q); fold the common 1/sqrt(H) scale (scale_factor = 1) here.
    inv_scale = jnp.float32(1.0 / math.sqrt(float(H)))
    q = jnp.dot(asp_ref[...].reshape(T, D), wq_ref[...],
                preferred_element_type=jnp.float32) + bq_ref[...]       # (T, H)
    q = q.reshape(T, 1, H) * inv_scale

    m = mask_ref[...]                                    # (T, N, 1), 0/1

    # ---- attention scores (1xH . HxN per slice) on the VPU/XLU ----------
    s_tw = jnp.sum(q * k_t, axis=-1, keepdims=True)          # AS_TW (T, N, 1)
    s_wi = jnp.sum(q * k_f, axis=-1, keepdims=True) * m      # AS_Wi (masked keys)
    s_dw = jnp.sum(q * k_d, axis=-1, keepdims=True) * m      # AS_DW (masked keys)

    # GraphChannelAttLayer: per-channel scalar weights (init 1), summed.
    att = chw_ref[0] * s_tw + chw_ref[1] * s_wi + chw_ref[2] * s_dw

    # mask_logits + softmax over nodes (softmax_first = False path).
    att = att * m + (1.0 - m) * jnp.float32(-1e30)
    att = att - jnp.max(att, axis=1, keepdims=True)
    p = jnp.exp(att)
    p = p * pl.reciprocal(jnp.sum(p, axis=1, keepdims=True), approx=True)

    # rel_transform (opn='mult'): (W_V*m) * (T_V*m), plus one more *m before
    # the value contraction.  fmask is strictly 0/1 so mask^3 folds into one
    # multiply on the attention row.
    # TODO(synk): dropout on att_z is identity in eval mode (not implemented).
    out_ref[...] = jnp.sum((p * m) * (v_f * v_t), axis=1, keepdims=True)  # (T,1,H)


def _pick_ba_tile(BA, N, D):
    """Largest divisor of BA that keeps >= 2 grid steps (so both v7x
    TensorCores get work) and keeps the per-step bf16 feature tiles well
    inside the scoped VMEM budget (Pallas double-buffers them)."""
    budget = 4 * 1024 * 1024                  # bytes for the 3 node-feature tiles
    best = 1
    for t in range(1, BA + 1):
        if BA % t:
            continue
        if BA >= 2 and BA // t < 2:
            continue
        if 3 * t * N * D * 2 > budget:
            continue
        best = t
    return best


def disen_gat_forward(params, feature, dep_feature, aspect_feature,
                      all_type_feature, fmask):
    B, A, N, D = feature.shape
    H = params["wq"].shape[1]
    BA = B * A

    # Flatten (B, A); inputs stay unstacked (no extra HBM materialization).
    feat3 = feature.reshape(BA, N, D).astype(jnp.bfloat16)
    typ3 = all_type_feature.reshape(BA, N, D).astype(jnp.bfloat16)
    dep3 = dep_feature.reshape(BA, N, D).astype(jnp.bfloat16)
    asp3 = aspect_feature.reshape(BA, 1, D).astype(jnp.bfloat16)

    mask = jnp.broadcast_to(fmask[:, None, :], (B, A, N))
    mask = mask.reshape(BA, N, 1).astype(jnp.float32)

    wk = params["wk"].astype(jnp.bfloat16)
    wv = params["wv"].astype(jnp.bfloat16)
    wq = params["wq"].astype(jnp.bfloat16)

    T = _pick_ba_tile(BA, N, D)
    grid = (BA // T,)

    kernel = functools.partial(_disen_gat_kernel, n_nodes=N, ba_tile=T)

    out = pl.pallas_call(
        kernel,
        out_shape=jax.ShapeDtypeStruct((BA, 1, H), jnp.float32),
        grid=grid,
        in_specs=[
            pl.BlockSpec((T, N, D), lambda i: (i, 0, 0)),            # feature
            pl.BlockSpec((T, N, D), lambda i: (i, 0, 0)),            # type feature
            pl.BlockSpec((T, N, D), lambda i: (i, 0, 0)),            # dep feature
            pl.BlockSpec((T, 1, D), lambda i: (i, 0, 0)),            # aspect feature
            pl.BlockSpec((T, N, 1), lambda i: (i, 0, 0)),            # fmask
            pl.BlockSpec((D, H), lambda i: (0, 0)),                  # W_K
            pl.BlockSpec((D, H), lambda i: (0, 0)),                  # W_V
            pl.BlockSpec((D, H), lambda i: (0, 0)),                  # W_Q
            pl.BlockSpec((1, H), lambda i: (0, 0)),                  # b_K
            pl.BlockSpec((1, H), lambda i: (0, 0)),                  # b_V
            pl.BlockSpec((1, H), lambda i: (0, 0)),                  # b_Q
            pl.BlockSpec(memory_space=pltpu.MemorySpace.SMEM),       # channel weights
        ],
        out_specs=pl.BlockSpec((T, 1, H), lambda i: (i, 0, 0)),
        compiler_params=pltpu.CompilerParams(
            dimension_semantics=("parallel",),
            vmem_limit_bytes=32 * 1024 * 1024),
    )(feat3, typ3, dep3, asp3, mask, wk, wv, wq,
      params["bk"], params["bv"], params["bq"], params["chw"])
    return out.reshape(B, A, H)


def ref_forward(params, feature, dep_feature, aspect_feature,
                all_type_feature, fmask):
    """Pure-JAX f32 reference mirroring the PyTorch forward (fixed args)."""
    def lin(x, w, b):
        return jnp.matmul(x, w) + b

    DW_K = lin(dep_feature, params["wk"], params["bk"])
    AS_Q = lin(aspect_feature, params["wq"], params["bq"])
    W_K = lin(feature, params["wk"], params["bk"])
    W_V = lin(feature, params["wv"], params["bv"])
    T_K = lin(all_type_feature, params["wk"], params["bk"])
    T_V = lin(all_type_feature, params["wv"], params["bv"])

    H = AS_Q.shape[-1]
    scale = math.sqrt(float(H))                      # scale_factor = 1
    ASq = AS_Q[:, :, None, :]                        # (B, A, 1, H)
    fm = fmask[:, None, :]                           # (B, 1, N)

    AS_TW = jnp.matmul(ASq, jnp.swapaxes(T_K, -1, -2))[:, :, 0, :] / scale
    W_Km = W_K * fm[..., None]
    AS_Wi = jnp.matmul(ASq, jnp.swapaxes(W_Km, -1, -2))[:, :, 0, :] / scale
    DW_Km = DW_K * fm[..., None]
    AS_DW = jnp.matmul(ASq, jnp.swapaxes(DW_Km, -1, -2))[:, :, 0, :] / scale

    chw = params["chw"]
    att = chw[0] * AS_TW + chw[1] * AS_Wi + chw[2] * AS_DW
    att = att * fm + (1.0 - fm) * (-1e30)
    att = jax.nn.softmax(att, axis=-1)

    WV = (W_V * fm[..., None]) * (T_V * fm[..., None])   # opn = 'mult'
    z = jnp.matmul(att[:, :, None, :], WV * fm[..., None])[:, :, 0, :]
    return z


def _linear_init(key, din, dout):
    # matches nn.Linear default: U(-1/sqrt(fan_in), 1/sqrt(fan_in))
    bound = 1.0 / math.sqrt(din)
    kw, kb = jax.random.split(key)
    w = jax.random.uniform(kw, (din, dout), jnp.float32, -bound, bound)
    b = jax.random.uniform(kb, (1, dout), jnp.float32, -bound, bound)
    return w, b


if __name__ == "__main__":
    B, A, N = 2, 4, 16
    in_dim = 64
    num_heads = 4
    H = in_dim // num_heads     # hidden_dim = in_dim // args.num_heads

    key = jax.random.PRNGKey(0)
    kq, kk, kv, kf, kd, ka, kt = jax.random.split(key, 7)

    wq, bq = _linear_init(kq, in_dim, H)
    wk, bk = _linear_init(kk, in_dim, H)
    wv, bv = _linear_init(kv, in_dim, H)
    params = {
        "wq": wq, "bq": bq,
        "wk": wk, "bk": bk,
        "wv": wv, "bv": bv,
        "chw": jnp.ones((3,), jnp.float32),   # GraphChannelAttLayer weight, init=1
    }

    feature = jax.random.normal(kf, (B, A, N, in_dim), jnp.float32)
    dep_feature = jax.random.normal(kd, (B, A, N, in_dim), jnp.float32)
    aspect_feature = jax.random.normal(ka, (B, A, in_dim), jnp.float32)
    all_type_feature = jax.random.normal(kt, (B, A, N, in_dim), jnp.float32)
    lengths = jnp.array([12, 9], dtype=jnp.int32)
    fmask = (jnp.arange(N)[None, :] < lengths[:, None]).astype(jnp.float32)  # (B, N)

    out = disen_gat_forward(params, feature, dep_feature, aspect_feature,
                            all_type_feature, fmask)
    out = jax.block_until_ready(out)

    ref = ref_forward(params, feature, dep_feature, aspect_feature,
                      all_type_feature, fmask)
    # Tolerance covers the bf16 MXU operands + approx reciprocal in the kernel
    # (the reference stays in f32).
    np.testing.assert_allclose(np.asarray(out), np.asarray(ref),
                               rtol=2e-2, atol=2e-2)
    print("KERNEL_OK")
</pallas_src>

<mosaic_0001>
module attributes {stable_mosaic.version = 11 : i64} {
  func.func @_disen_gat_kernel(%arg0: i32, %arg1: memref<4x16x64xbf16, #tpu.memory_space<vmem>>, %arg2: memref<4x16x64xbf16, #tpu.memory_space<vmem>>, %arg3: memref<4x16x64xbf16, #tpu.memory_space<vmem>>, %arg4: memref<4x1x64xbf16, #tpu.memory_space<vmem>>, %arg5: memref<4x16x1xf32, #tpu.memory_space<vmem>>, %arg6: memref<64x16xbf16, #tpu.memory_space<vmem>>, %arg7: memref<64x16xbf16, #tpu.memory_space<vmem>>, %arg8: memref<64x16xbf16, #tpu.memory_space<vmem>>, %arg9: memref<1x16xf32, #tpu.memory_space<vmem>>, %arg10: memref<1x16xf32, #tpu.memory_space<vmem>>, %arg11: memref<1x16xf32, #tpu.memory_space<vmem>>, %arg12: memref<3xf32, #tpu.memory_space<smem>>, %arg13: memref<4x1x16xf32, #tpu.memory_space<vmem>>) attributes {dimension_semantics = [#tpu.dimension_semantics<parallel>], iteration_bounds = array<i64: 2>, scalar_prefetch = 0 : i64, scratch_operands = 0 : i64, tpu.core_type = #tpu.core_type<tc>, window_params = [{transform_indices = @transform_0, window_bounds = array<i64: 4, 16, 64>}, {transform_indices = @transform_1, window_bounds = array<i64: 4, 16, 64>}, {transform_indices = @transform_2, window_bounds = array<i64: 4, 16, 64>}, {transform_indices = @transform_3, window_bounds = array<i64: 4, 1, 64>}, {transform_indices = @transform_4, window_bounds = array<i64: 4, 16, 1>}, {pipeline_mode = #tpu.pipeline_mode<synchronous>, transform_indices = @transform_5, window_bounds = array<i64: 64, 16>}, {pipeline_mode = #tpu.pipeline_mode<synchronous>, transform_indices = @transform_6, window_bounds = array<i64: 64, 16>}, {pipeline_mode = #tpu.pipeline_mode<synchronous>, transform_indices = @transform_7, window_bounds = array<i64: 64, 16>}, {pipeline_mode = #tpu.pipeline_mode<synchronous>, transform_indices = @transform_8, window_bounds = array<i64: 1, 16>}, {pipeline_mode = #tpu.pipeline_mode<synchronous>, transform_indices = @transform_9, window_bounds = array<i64: 1, 16>}, {pipeline_mode = #tpu.pipeline_mode<synchronous>, transform_indices = @transform_10, window_bounds = array<i64: 1, 16>}, {transform_indices = @transform_11, window_bounds = array<i64: 3>}, {transform_indices = @transform_12, window_bounds = array<i64: 4, 1, 16>}]} {
    %c0 = arith.constant 0 : index
    %c0_0 = arith.constant 0 : index
    %c0_1 = arith.constant 0 : index
    %0 = vector.load %arg1[%c0, %c0_0, %c0_1] : memref<4x16x64xbf16, #tpu.memory_space<vmem>>, vector<4x16x64xbf16>
    %1 = vector.shape_cast %0 : vector<4x16x64xbf16> to vector<64x64xbf16>
    %c0_2 = arith.constant 0 : index
    %c0_3 = arith.constant 0 : index
    %c0_4 = arith.constant 0 : index
    %2 = vector.load %arg2[%c0_2, %c0_3, %c0_4] : memref<4x16x64xbf16, #tpu.memory_space<vmem>>, vector<4x16x64xbf16>
    %3 = vector.shape_cast %2 : vector<4x16x64xbf16> to vector<64x64xbf16>
    %c0_5 = arith.constant 0 : index
    %c0_6 = arith.constant 0 : index
    %c0_7 = arith.constant 0 : index
    %4 = vector.load %arg3[%c0_5, %c0_6, %c0_7] : memref<4x16x64xbf16, #tpu.memory_space<vmem>>, vector<4x16x64xbf16>
    %5 = vector.shape_cast %4 : vector<4x16x64xbf16> to vector<64x64xbf16>
    %6 = tpu.concatenate %1, %3, %5 in 0 : vector<64x64xbf16>, vector<64x64xbf16>, vector<64x64xbf16> -> vector<192x64xbf16>
    %c0_8 = arith.constant 0 : index
    %c0_9 = arith.constant 0 : index
    %7 = vector.load %arg6[%c0_8, %c0_9] : memref<64x16xbf16, #tpu.memory_space<vmem>>, vector<64x16xbf16>
    %cst = arith.constant dense<0.000000e+00> : vector<192x16xf32>
    %8 = tpu.matmul %6, %7, %cst {dimension_numbers = #tpu.dot_dimension_numbers<[1], [0], [0], [1], [0, 0, 1, 1], [], []>} : vector<192x64xbf16>, vector<64x16xbf16>, vector<192x16xf32> -> vector<192x16xf32>
    %c0_10 = arith.constant 0 : index
    %c0_11 = arith.constant 0 : index
    %9 = vector.load %arg9[%c0_10, %c0_11] : memref<1x16xf32, #tpu.memory_space<vmem>>, vector<1x16xf32>
    %10 = vector.broadcast %9 : vector<1x16xf32> to vector<192x16xf32>
    %11 = arith.addf %8, %10 : vector<192x16xf32>
    %12 = tpu.concatenate %1, %3 in 0 : vector<64x64xbf16>, vector<64x64xbf16> -> vector<128x64xbf16>
    %c0_12 = arith.constant 0 : index
    %c0_13 = arith.constant 0 : index
    %13 = vector.load %arg7[%c0_12, %c0_13] : memref<64x16xbf16, #tpu.memory_space<vmem>>, vector<64x16xbf16>
    %cst_14 = arith.constant dense<0.000000e+00> : vector<128x16xf32>
    %14 = tpu.matmul %12, %13, %cst_14 {dimension_numbers = #tpu.dot_dimension_numbers<[1], [0], [0], [1], [0, 0, 1, 1], [], []>} : vector<128x64xbf16>, vector<64x16xbf16>, vector<128x16xf32> -> vector<128x16xf32>
    %c0_15 = arith.constant 0 : index
    %c0_16 = arith.constant 0 : index
    %15 = vector.load %arg10[%c0_15, %c0_16] : memref<1x16xf32, #tpu.memory_space<vmem>>, vector<1x16xf32>
    %16 = vector.broadcast %15 : vector<1x16xf32> to vector<128x16xf32>
    %17 = arith.addf %14, %16 : vector<128x16xf32>
    %18 = vector.extract_strided_slice %11 {offsets = [0, 0], sizes = [64, 16], strides = [1, 1]} : vector<192x16xf32> to vector<64x16xf32>
    %19 = vector.shape_cast %18 : vector<64x16xf32> to vector<4x16x16xf32>
    %20 = vector.extract_strided_slice %11 {offsets = [64, 0], sizes = [64, 16], strides = [1, 1]} : vector<192x16xf32> to vector<64x16xf32>
    %21 = vector.shape_cast %20 : vector<64x16xf32> to vector<4x16x16xf32>
    %22 = vector.extract_strided_slice %11 {offsets = [128, 0], sizes = [64, 16], strides = [1, 1]} : vector<192x16xf32> to vector<64x16xf32>
    %23 = vector.shape_cast %22 : vector<64x16xf32> to vector<4x16x16xf32>
    %24 = vector.extract_strided_slice %17 {offsets = [0, 0], sizes = [64, 16], strides = [1, 1]} : vector<128x16xf32> to vector<64x16xf32>
    %25 = vector.shape_cast %24 : vector<64x16xf32> to vector<4x16x16xf32>
    %26 = vector.extract_strided_slice %17 {offsets = [64, 0], sizes = [64, 16], strides = [1, 1]} : vector<128x16xf32> to vector<64x16xf32>
    %27 = vector.shape_cast %26 : vector<64x16xf32> to vector<4x16x16xf32>
    %c0_17 = arith.constant 0 : index
    %c0_18 = arith.constant 0 : index
    %c0_19 = arith.constant 0 : index
    %28 = vector.load %arg4[%c0_17, %c0_18, %c0_19] : memref<4x1x64xbf16, #tpu.memory_space<vmem>>, vector<4x1x64xbf16>
    %29 = vector.shape_cast %28 : vector<4x1x64xbf16> to vector<4x64xbf16>
    %c0_20 = arith.constant 0 : index
    %c0_21 = arith.constant 0 : index
    %30 = vector.load %arg8[%c0_20, %c0_21] : memref<64x16xbf16, #tpu.memory_space<vmem>>, vector<64x16xbf16>
    %cst_22 = arith.constant dense<0.000000e+00> : vector<4x16xf32>
    %31 = tpu.matmul %29, %30, %cst_22 {dimension_numbers = #tpu.dot_dimension_numbers<[1], [0], [0], [1], [0, 0, 1, 1], [], []>} : vector<4x64xbf16>, vector<64x16xbf16>, vector<4x16xf32> -> vector<4x16xf32>
    %c0_23 = arith.constant 0 : index
    %c0_24 = arith.constant 0 : index
    %32 = vector.load %arg11[%c0_23, %c0_24] : memref<1x16xf32, #tpu.memory_space<vmem>>, vector<1x16xf32>
    %33 = vector.broadcast %32 : vector<1x16xf32> to vector<4x16xf32>
    %34 = arith.addf %31, %33 : vector<4x16xf32>
    %35 = vector.shape_cast %34 : vector<4x16xf32> to vector<4x1x16xf32>
    %cst_25 = arith.constant 2.500000e-01 : f32
    %36 = vector.broadcast %cst_25 : f32 to vector<4x1x16xf32>
    %37 = arith.mulf %35, %36 : vector<4x1x16xf32>
    %c0_26 = arith.constant 0 : index
    %c0_27 = arith.constant 0 : index
    %c0_28 = arith.constant 0 : index
    %38 = vector.load %arg5[%c0_26, %c0_27, %c0_28] : memref<4x16x1xf32, #tpu.memory_space<vmem>>, vector<4x16x1xf32>
    %39 = vector.broadcast %37 : vector<4x1x16xf32> to vector<4x16x16xf32>
    %40 = arith.mulf %39, %21 : vector<4x16x16xf32>
    %cst_29 = arith.constant dense<0.000000e+00> : vector<4x16xf32>
    %41 = vector.multi_reduction <add>, %40, %cst_29 [2] : vector<4x16x16xf32> to vector<4x16xf32>
    %42 = vector.shape_cast %41 : vector<4x16xf32> to vector<4x16x1xf32>
    %43 = vector.broadcast %37 : vector<4x1x16xf32> to vector<4x16x16xf32>
    %44 = arith.mulf %43, %19 : vector<4x16x16xf32>
    %cst_30 = arith.constant dense<0.000000e+00> : vector<4x16xf32>
    %45 = vector.multi_reduction <add>, %44, %cst_30 [2] : vector<4x16x16xf32> to vector<4x16xf32>
    %46 = vector.shape_cast %45 : vector<4x16xf32> to vector<4x16x1xf32>
    %47 = arith.mulf %46, %38 : vector<4x16x1xf32>
    %48 = vector.broadcast %37 : vector<4x1x16xf32> to vector<4x16x16xf32>
    %49 = arith.mulf %48, %23 : vector<4x16x16xf32>
    %cst_31 = arith.constant dense<0.000000e+00> : vector<4x16xf32>
    %50 = vector.multi_reduction <add>, %49, %cst_31 [2] : vector<4x16x16xf32> to vector<4x16xf32>
    %51 = vector.shape_cast %50 : vector<4x16xf32> to vector<4x16x1xf32>
    %52 = arith.mulf %51, %38 : vector<4x16x1xf32>
    %c0_32 = arith.constant 0 : index
    %53 = memref.load %arg12[%c0_32] : memref<3xf32, #tpu.memory_space<smem>>
    %54 = vector.broadcast %53 : f32 to vector<4x16x1xf32>
    %55 = arith.mulf %54, %42 : vector<4x16x1xf32>
    %c1 = arith.constant 1 : index
    %56 = memref.load %arg12[%c1] : memref<3xf32, #tpu.memory_space<smem>>
    %57 = vector.broadcast %56 : f32 to vector<4x16x1xf32>
    %58 = arith.mulf %57, %47 : vector<4x16x1xf32>
    %59 = arith.addf %55, %58 : vector<4x16x1xf32>
    %c2 = arith.constant 2 : index
    %60 = memref.load %arg12[%c2] : memref<3xf32, #tpu.memory_space<smem>>
    %61 = vector.broadcast %60 : f32 to vector<4x16x1xf32>
    %62 = arith.mulf %61, %52 : vector<4x16x1xf32>
    %63 = arith.addf %59, %62 : vector<4x16x1xf32>
    %64 = arith.mulf %63, %38 : vector<4x16x1xf32>
    %cst_33 = arith.constant 1.000000e+00 : f32
    %65 = vector.broadcast %cst_33 : f32 to vector<4x16x1xf32>
    %66 = arith.subf %65, %38 : vector<4x16x1xf32>
    %cst_34 = arith.constant -1.000000e+30 : f32
    %67 = vector.broadcast %cst_34 : f32 to vector<4x16x1xf32>
    %68 = arith.mulf %66, %67 : vector<4x16x1xf32>
    %69 = arith.addf %64, %68 : vector<4x16x1xf32>
    %cst_35 = arith.constant dense<0xFF800000> : vector<4x1xf32>
    %70 = vector.multi_reduction <maximumf>, %69, %cst_35 [1] : vector<4x16x1xf32> to vector<4x1xf32>
    %71 = vector.shape_cast %70 : vector<4x1xf32> to vector<4x1x1xf32>
    %72 = vector.broadcast %71 : vector<4x1x1xf32> to vector<4x16x1xf32>
    %73 = arith.subf %69, %72 : vector<4x16x1xf32>
    %74 = math.exp %73 : vector<4x16x1xf32>
    %cst_36 = arith.constant dense<0.000000e+00> : vector<4x1xf32>
    %75 = vector.multi_reduction <add>, %74, %cst_36 [1] : vector<4x16x1xf32> to vector<4x1xf32>
    %76 = vector.shape_cast %75 : vector<4x1xf32> to vector<4x1x1xf32>
    %77 = tpu.reciprocal %76 {approx = true} : vector<4x1x1xf32> -> vector<4x1x1xf32>
    %78 = vector.broadcast %77 : vector<4x1x1xf32> to vector<4x16x1xf32>
    %79 = arith.mulf %74, %78 : vector<4x16x1xf32>
    %80 = arith.mulf %79, %38 : vector<4x16x1xf32>
    %81 = arith.mulf %25, %27 : vector<4x16x16xf32>
    %82 = vector.broadcast %80 : vector<4x16x1xf32> to vector<4x16x16xf32>
    %83 = arith.mulf %82, %81 : vector<4x16x16xf32>
    %cst_37 = arith.constant dense<0.000000e+00> : vector<4x16xf32>
    %84 = vector.multi_reduction <add>, %83, %cst_37 [1] : vector<4x16x16xf32> to vector<4x16xf32>
    %85 = vector.shape_cast %84 : vector<4x16xf32> to vector<4x1x16xf32>
    %c0_38 = arith.constant 0 : index
    %c0_39 = arith.constant 0 : index
    %c0_40 = arith.constant 0 : index
    %86 = vector.load %arg13[%c0_38, %c0_39, %c0_40] : memref<4x1x16xf32, #tpu.memory_space<vmem>>, vector<4x1x16xf32>
    tpu.vector_store %arg13[%c0_38, %c0_39, %c0_40], %85 {strides = array<i32>} : memref<4x1x16xf32, #tpu.memory_space<vmem>>, vector<4x1x16xf32>,
    return
  }
  func.func @transform_0(%arg0: i32) -> (i32, i32, i32) {
    %c0_i32 = arith.constant 0 : i32
    %c0_i32_0 = arith.constant 0 : i32
    %c0_i32_1 = arith.constant 0 : i32
    return %arg0, %c0_i32, %c0_i32_0 : i32, i32, i32
  }
  func.func @transform_1(%arg0: i32) -> (i32, i32, i32) {
    %c0_i32 = arith.constant 0 : i32
    %c0_i32_0 = arith.constant 0 : i32
    %c0_i32_1 = arith.constant 0 : i32
    return %arg0, %c0_i32, %c0_i32_0 : i32, i32, i32
  }
  func.func @transform_2(%arg0: i32) -> (i32, i32, i32) {
    %c0_i32 = arith.constant 0 : i32
    %c0_i32_0 = arith.constant 0 : i32
    %c0_i32_1 = arith.constant 0 : i32
    return %arg0, %c0_i32, %c0_i32_0 : i32, i32, i32
  }
  func.func @transform_3(%arg0: i32) -> (i32, i32, i32) {
    %c0_i32 = arith.constant 0 : i32
    %c0_i32_0 = arith.constant 0 : i32
    %c0_i32_1 = arith.constant 0 : i32
    return %arg0, %c0_i32, %c0_i32_0 : i32, i32, i32
  }
  func.func @transform_4(%arg0: i32) -> (i32, i32, i32) {
    %c0_i32 = arith.constant 0 : i32
    %c0_i32_0 = arith.constant 0 : i32
    %c0_i32_1 = arith.constant 0 : i32
    return %arg0, %c0_i32, %c0_i32_0 : i32, i32, i32
  }
  func.func @transform_5(%arg0: i32) -> (i32, i32) {
    %c0_i32 = arith.constant 0 : i32
    %c0_i32_0 = arith.constant 0 : i32
    %c0_i32_1 = arith.constant 0 : i32
    return %c0_i32, %c0_i32_0 : i32, i32
  }
  func.func @transform_6(%arg0: i32) -> (i32, i32) {
    %c0_i32 = arith.constant 0 : i32
    %c0_i32_0 = arith.constant 0 : i32
    %c0_i32_1 = arith.constant 0 : i32
    return %c0_i32, %c0_i32_0 : i32, i32
  }
  func.func @transform_7(%arg0: i32) -> (i32, i32) {
    %c0_i32 = arith.constant 0 : i32
    %c0_i32_0 = arith.constant 0 : i32
    %c0_i32_1 = arith.constant 0 : i32
    return %c0_i32, %c0_i32_0 : i32, i32
  }
  func.func @transform_8(%arg0: i32) -> (i32, i32) {
    %c0_i32 = arith.constant 0 : i32
    %c0_i32_0 = arith.constant 0 : i32
    %c0_i32_1 = arith.constant 0 : i32
    return %c0_i32, %c0_i32_0 : i32, i32
  }
  func.func @transform_9(%arg0: i32) -> (i32, i32) {
    %c0_i32 = arith.constant 0 : i32
    %c0_i32_0 = arith.constant 0 : i32
    %c0_i32_1 = arith.constant 0 : i32
    return %c0_i32, %c0_i32_0 : i32, i32
  }
  func.func @transform_10(%arg0: i32) -> (i32, i32) {
    %c0_i32 = arith.constant 0 : i32
    %c0_i32_0 = arith.constant 0 : i32
    %c0_i32_1 = arith.constant 0 : i32
    return %c0_i32, %c0_i32_0 : i32, i32
  }
  func.func @transform_11(%arg0: i32) -> i32 {
    %c0_i32 = arith.constant 0 : i32
    %c0_i32_0 = arith.constant 0 : i32
    return %c0_i32 : i32
  }
  func.func @transform_12(%arg0: i32) -> (i32, i32, i32) {
    %c0_i32 = arith.constant 0 : i32
    %c0_i32_0 = arith.constant 0 : i32
    %c0_i32_1 = arith.constant 0 : i32
    return %arg0, %c0_i32, %c0_i32_0 : i32, i32, i32
  }
}

</mosaic_0001>

<bundles_post_ra>
// kernel: tpu_custom_call.1
= control target key start
LH: loop header
LB: loop body
LE: loop exit
PB: predicated region body
PF: predicated region fallthrough
CT: control target
= control target key end

     0   :  { %s2373_s0 = inlined_call_operand.vmem [shape: bf16[8,16,64], index: 0, kind: input, shape index: {}]   ;;  %s2374_s1 = inlined_call_operand.vmem [shape: bf16[8,16,64], index: 1, kind: input, shape index: {}]   ;;  %s2375_s2 = inlined_call_operand.vmem [shape: bf16[8,16,64], index: 2, kind: input, shape index: {}]   ;;  %s2376_s3 = inlined_call_operand.vmem [shape: bf16[8,1,64], index: 3, kind: input, shape index: {}]   ;;  %s2377_s4 = inlined_call_operand.vmem [shape: f32[8,16,1], index: 4, kind: input, shape index: {}]   ;;  %s2378_s5 = inlined_call_operand.vmem [shape: bf16[64,16], index: 5, kind: input, shape index: {}]   ;;  %s2379_s6 = inlined_call_operand.vmem [shape: bf16[64,16], index: 6, kind: input, shape index: {}]   ;;  %s2380_s7 = inlined_call_operand.vmem [shape: bf16[64,16], index: 7, kind: input, shape index: {}]   ;;  %s2381_s8 = inlined_call_operand.vmem [shape: f32[1,16], index: 8, kind: input, shape index: {}]   ;;  %s2382_s9 = inlined_call_operand.vmem [shape: f32[1,16], index: 9, kind: input, shape index: {}]   ;;  %s2383_s10 = inlined_call_operand.vmem [shape: f32[1,16], index: 10, kind: input, shape index: {}]   ;;  %s2384_s11 = inlined_call_operand.vmem [shape: f32[3], index: 11, kind: input, shape index: {}]   ;;  %s2385_s12 = inlined_call_operand.hbm [shape: f32[8,1,16], index: 12, kind: output, shape index: {}]  }
   0x1   :  { %2387 = sst [smem:[#allocation10_spill]] %s2376_s3 }
   0x2   :  { %2388 = sst [smem:[#allocation11_spill]] %s2384_s11 }
   0x3   :  { %17 = vsyncpa [#allocation4], 0 }
   0x4   :  { %18 = vsyncpa [#allocation3], 0 }
   0x5   :  { %20 = vsyncpa [#allocation3 + $0x1], 0  ;;  %s1908_s21 = smov 0   ;;  %s1910_s22 = smov 0  }
   0x6   :  { %s1912_s23 = smov 0   ;;  %s1914_s24 = smov 0  }
   0x7 LB: > { %2389 = sst [smem:[#allocation8_spill]] %s1833_s23  ;;  %s1493_s25 = sadd.s32 4294967295, %s1837_s24   ;;  %s1837_s24 = sphi %s1914_s24, %s2399_s24   ;;  %s1833_s23 = sphi %s1912_s23, %s2396_s23   ;;  %s1829_s22 = sphi %s1910_s22, %s2398_s22   ;;  %s1825_s21 = sphi %s1908_s21, %s2397_s21  }
   0x8   : > { %s1494_s26 = sadd.s32 4294967294, %s1837_s24   ;;  %s1931_s27 = sadd.s32 1, %s1837_s24  }
   0x9   : > { %s310_s28 = sadd.s32 1, %s1833_s23  ;;  %s307_s29 = ssub.s32 %s1837_s24, %s1931_s27 }
   0xa   : > { %p320_p0 = scmp.ne.s32.totalorder %s1833_s23, %s1829_s22  ;;  %p308_p1 = scmp.eq.s32.totalorder %s307_s29, 0 }
   0xb   : > { %p321_p2 = scmp.eq.s32.totalorder %s1493_s25, 1  ;;  %p326_p3 = scmp.ne.s32.totalorder %s1829_s22, %s1825_s21 }
   0xc   : > { %p327_p4 = scmp.eq.s32.totalorder %s1494_s26, 1  ;;  %p1495_p7 = scmp.ge.s32.totalorder %s1837_s24, 1 }
   0xd   : > { %s1941_s30 = scalar_select %p308_p1, %s1833_s23, %s310_s28  }
   0xe   : > { %p1943_p5 = por %p321_p2, %p320_p0  ;;  %p1947_p6 = por %p327_p4, %p326_p3 }
   0xf   : > { %2390 = sst [smem:[#allocation9_spill]] %s1941_s30  ;;  %p334_p8 = scmp.lt.s32.totalorder %s1837_s24, 3 }
  0x10   : > { %p1687_p9 = scmp.eq.s32.totalorder %s1493_s25, 0  ;;  %s2393_s11 = sld [smem:[#allocation11_spill]] }
  0x11   : > { %p335_p10 = pnand %p1495_p7, %p334_p8  ;;  %s1839_s18 = smov [#allocation2]  }
  0x13   : > { %p1679_p11 = pneg %p335_p10  ;;  %425 = sbr.rel (%p335_p10) target bundleno = 599 (0x257), region = 68 }
  0x15   : > { %p1680_p12 = pnand %p1687_p9, %p1679_p11 }
  0x16   : > { %s364_s17 = sshll.u32 %s2393_s11, 4  ;;  %s365_s17 = int_to_ptr.vmem [resolvable:$true] %s364_s17 }
  0x17   : > { %1682 = dma.vmem_to_smem (!%p1680_p12), %s365_s17, 16, %s1839_s18, [#allocation4]  }
  0x18   : > { %1816 = dma.done.wait (%p1687_p9), [#allocation4], 16  }
  0x19   : > { %1818 = vsyncadd (%p1687_p9), [#allocation4], 4294967280 }
  0x1a   : > { %432 = sfence }
  0x1b   : > { %v1656_v0 = vld [vmem:[%s2378_s5 + $0x18] sm:$0xff]  ;;  %s1962_s29 = sshll.u32 %s1493_s25, 2  ;;  %v1655_v2 = vld [vmem:[%s2378_s5 + $0x10] sm:$0xff]  ;;  %s2394_s3 = sld [smem:[#allocation10_spill]]  ;;  %v1654_v4 = vld [vmem:[%s2378_s5 + $0x8] sm:$0xff]  ;;  %vm647_vm0 = vcmask 523264  }
  0x1c   : > { %v1660_v1 = vld [vmem:[%s2379_s6 + $0x18] sm:$0xff]  ;;  %p493_p13 = scmp.lt.s32.totalorder %s1962_s29, 7  ;;  %688 = vmatpush.bf16.msra.mxu0 %v1656_v0  ;;  %1665 = vmatpush.bf16.msra.mxu3 %v1656_v0  ;;  %v1659_v3 = vld [vmem:[%s2379_s6 + $0x10] sm:$0xff]  ;;  %v1658_v6 = vld [vmem:[%s2379_s6 + $0x8] sm:$0xff]  ;;  %vm875_vm1 = vcmask 1041409   ;;  %vm878_vm2 = vcmask 1042434   ;;  %s1371_s30 = scalar_lea.hbm %s2385_s12, %s1962_s29 }
  0x1d   : > { %793 = vmatpush.bf16.msra.mxu1 %v1660_v1  ;;  %1669 = vmatpush.bf16.msra.mxu2 %v1660_v1  ;;  %v1653_v7 = vld [vmem:[%s2378_s5] sm:$0xff]  ;;  %v1664_v9 = vld [vmem:[%s2380_s7 + $0x18] sm:$0xff]  ;;  %v1663_v14 = vld [vmem:[%s2380_s7 + $0x10] sm:$0xff]  ;;  %vm881_vm3 = vcmask 1043459   ;;  %vm963_vm4 = vcmask 130048   ;;  %s1631_s15 = sld [smem:[#allocation2 + $0x1]] }
  0x1e   : > { %s1972_s19 = scalar_select %p493_p13, %s1962_s29, 7  ;;  %v1657_v8 = vld [vmem:[%s2379_s6] sm:$0xff]  ;;  %v1662_v15 = vld [vmem:[%s2380_s7 + $0x8] sm:$0xff]  ;;  %vm1146_vm5 = vcmask 7168   ;;  %vm1355_vm6 = vcmask 122880  }
  0x1f   : > { %v1661_v18 = vld [vmem:[%s2380_s7] sm:$0xff]  ;;  %s1068_s17 = sld [smem:[#allocation2]] }
  0x20   : > { %689 = vmatpush.bf16.msra.mxu0 %v1655_v2  ;;  %1666 = vmatpush.bf16.msra.mxu3 %v1655_v2  ;;  %s1988_s18 = sshll.u32 %s1972_s19, 3  ;;  %v2073_v57 = vld [vmem:[%s2382_s9] ss:$0 sm:$0xff]  ;;  %s1640_s28 = sshll.u32 %s1972_s19, 4 }
  0x21   : > { %s1978_s26 = scalar_lea.vmem %s2394_s3, %s1972_s19  ;;  %794 = vmatpush.bf16.msra.mxu1 %v1659_v3  ;;  %1670 = vmatpush.bf16.msra.mxu2 %v1659_v3  ;;  %s1997_s3 = scalar_lea.vmem %s2373_s0, %s1988_s18  ;;  %v1731_v0 = vld [vmem:[%s2383_s10] ss:$0 sm:$0xff] }
  0x22   : > { %v838_v5 = vld [vmem:[%s1978_s26] sm:$0x1]  ;;  %s2003_s16 = scalar_lea.vmem %s2374_s1, %s1988_s18  ;;  %v839_v10 = vld [vmem:[%s1978_s26 + $0x1] sm:$0x1]  ;;  %v840_v16 = vld [vmem:[%s1978_s26 + $0x2] sm:$0x1]  ;;  %s511_s20 = scalar_lea.vmem %s2375_s2, %s1988_s18 }
  0x23   : > { %855 = vst [vmem:[#allocation1] ss:$9 sm:$0xff] %v838_v5  ;;  %v1641_v11 = vld [vmem:[%s1997_s3] sm:$0xff]  ;;  %v1647_v12 = vld [vmem:[%s2003_s16 + $0x10] sm:$0xff]  ;;  %v1642_v20 = vld [vmem:[%s1997_s3 + $0x8] sm:$0xff]  ;;  %s489_s19 = sand.u32 1, %s1829_s22  }
  0x24   : > { %690 = vmatpush.bf16.msra.mxu0 %v1654_v4  ;;  %1667 = vmatpush.bf16.msra.mxu3 %v1654_v4  ;;  %v841_v19 = vld [vmem:[%s1978_s26 + $0x3] sm:$0x1]  ;;  %v1648_v21 = vld [vmem:[%s2003_s16 + $0x18] sm:$0xff]  ;;  %v1643_v34 = vld [vmem:[%s1997_s3 + $0x10] sm:$0xff]  ;;  %s1500_s18 = sshll.u32 %s489_s19, 2 }
  0x25   : > { %795 = vmatpush.bf16.msra.mxu1 %v1658_v6  ;;  %1671 = vmatpush.bf16.msra.mxu2 %v1658_v6  ;;  %v1649_v35 = vld [vmem:[%s511_s20] sm:$0xff]  ;;  %v1644_v37 = vld [vmem:[%s1997_s3 + $0x18] sm:$0xff]  ;;  %v1650_v38 = vld [vmem:[%s511_s20 + $0x8] sm:$0xff]  ;;  %s1632_s3 = sld [smem:[#allocation2 + $0x2]] }
  0x26   : > { %v1645_v39 = vld [vmem:[%s2003_s16] sm:$0xff]  ;;  %v1651_v40 = vld [vmem:[%s511_s20 + $0x10] sm:$0xff]  ;;  %v1646_v41 = vld [vmem:[%s2003_s16 + $0x8] sm:$0xff]  ;;  %s2321_s16 = scalar_lea.vmem [#allocation5], %s1500_s18 }
  0x27   : > { %v1652_v42 = vld [vmem:[%s511_s20 + $0x18] sm:$0xff]  ;;  %v2087_v4 = vld [vmem:[%s2381_s8] ss:$0 sm:$0xff]  ;;  %s2189_s20 = scalar_lea.vmem %s2377_s4, %s1640_s28  ;;  %s1372_s28 = sshll.u32 %s2321_s16, 4  ;;  %s1373_s28 = int_to_ptr.vmem [resolvable:$true] %s1372_s28 }
  0x28   : > { %691 = vmatpush.bf16.msra.mxu0 %v1653_v7  ;;  %1668 = vmatpush.bf16.msra.mxu3 %v1653_v7 }
  0x29   : > { %796 = vmatpush.bf16.msra.mxu1 %v1657_v8  ;;  %1672 = vmatpush.bf16.msra.mxu2 %v1657_v8 }
  0x2a   : > { %v856_v13 = vld [vmem:[#allocation1] sm:$0xf] }
  0x2b   : > { %859 = vst [vmem:[#allocation1] ss:$9 sm:$0xff] %v839_v10  ;;  %1578 = vmatmul.msk.bf16.vlgmr.msra.gmra.mxu0 %vm647_vm0, %v1641_v11  ;;  %1584 = vmatmul.msk.bf16.vlgmr.msra.gmra.mxu3 %vm647_vm0, %v1647_v12  ;;  %v870_v25 = vunpack.c.l.b16 %v856_v13 }
  0x2c   : > { %1606 = vmatmul.msk.bf16.vlgmr.msra.gmra.mxu1 %vm647_vm0, %v1641_v11  ;;  %1612 = vmatmul.msk.bf16.vlgmr.msra.gmra.mxu2 %vm647_vm0, %v1647_v12 }
  0x2d   : > { %915 = vmatpush.bf16.msrb.mxu2 %v1664_v9 }
  0x31   : > { %916 = vmatpush.bf16.msrb.mxu2 %v1663_v14 }
  0x32   : > { %v860_v17 = vld [vmem:[#allocation1] sm:$0xf] }
  0x33   : > { %863 = vst [vmem:[#allocation1] ss:$9 sm:$0xff] %v840_v16  ;;  %v871_v22 = vunpack.c.l.b16 %v860_v17 }
  0x35   : > { %917 = vmatpush.bf16.msrb.mxu2 %v1662_v15  ;;  %v874_v26 = vrot.slane %v871_v22, 7 }
  0x37   : > { %v876_v28 = vsel %vm875_vm1, %v874_v26, %v870_v25 }
  0x39   : > { %918 = vmatpush.bf16.msrb.mxu2 %v1661_v18 }
  0x3a   : > { %v864_v23 = vld [vmem:[#allocation1] sm:$0xf] }
  0x3b   : > { %867 = vst [vmem:[#allocation1] ss:$9 sm:$0xff] %v841_v19  ;;  %v872_v24 = vunpack.c.l.b16 %v864_v23  ;;  %1579 = vmatmul.msk.bf16.gmra.mxu0 %vm647_vm0, %v1642_v20  ;;  %1585 = vmatmul.msk.bf16.gmra.mxu3 %vm647_vm0, %v1648_v21 }
  0x3c   : > { %1607 = vmatmul.msk.bf16.gmra.mxu1 %vm647_vm0, %v1642_v20  ;;  %1613 = vmatmul.msk.bf16.gmra.mxu2 %vm647_vm0, %v1648_v21 }
  0x3d   : > { %v877_v27 = vrot.slane %v872_v24, 6 }
  0x3f   : > { %v879_v31 = vsel %vm878_vm2, %v877_v27, %v876_v28 }
  0x42   : > { %v868_v29 = vld [vmem:[#allocation1] sm:$0xf] }
  0x43   : > { %v873_v30 = vunpack.c.l.b16 %v868_v29 }
  0x45   : > { %v880_v32 = vrot.slane %v873_v30, 5 }
  0x47   : > { %v882_v33 = vsel %vm881_vm3, %v880_v32, %v879_v31 }
  0x48   : > { %v883_v36 = vpack.c.b16 %v882_v33, %v882_v33 }
  0x4b   : > { %1580 = vmatmul.msk.bf16.gmra.mxu0 %vm647_vm0, %v1643_v34  ;;  %1586 = vmatmul.msk.bf16.gmra.mxu3 %vm647_vm0, %v1649_v35 }
  0x4c   : > { %1608 = vmatmul.msk.bf16.gmra.mxu1 %vm647_vm0, %v1643_v34  ;;  %1630 = vmatmul.msk.bf16.vlgmr.msrb.gmra.mxu2 %vm647_vm0, %v883_v36 }
  0x5b   : > { %1581 = vmatmul.msk.bf16.gmra.mxu0 %vm647_vm0, %v1644_v37  ;;  %1587 = vmatmul.msk.bf16.gmra.mxu3 %vm647_vm0, %v1650_v38 }
  0x5c   : > { %1609 = vmatmul.msk.bf16.gmra.mxu1 %vm647_vm0, %v1644_v37 }
  0x6b   : > { %1582 = vmatmul.msk.bf16.gmra.mxu0 %vm647_vm0, %v1645_v39  ;;  %1588 = vmatmul.msk.bf16.gmra.mxu3 %vm647_vm0, %v1651_v40 }
  0x6c   : > { %1610 = vmatmul.msk.bf16.gmra.mxu1 %vm647_vm0, %v1645_v39 }
  0x7b   : > { %1583 = vmatmul.msk.bf16.gmra.mxu0 %vm647_vm0, %v1646_v41  ;;  %1589 = vmatmul.msk.bf16.gmra.mxu3 %vm647_vm0, %v1652_v42 }
  0x7c   : > { %1611 = vmatmul.msk.bf16.gmra.mxu1 %vm647_vm0, %v1646_v41 }
  0xa8   : > { %v693_v43 = vpop.f32.mrf.mxu0 }
  0xa9   : > { %v2056_v44 = vpop.f32.mrf.mxu1  ;;  %v694_v17 = vadd.f32 %v2087_v4, %v693_v43 }
  0xae   : > { %v2058_v45 = vpop.f32.mrf.mxu3 }
  0xaf   : > { %v828_v46 = vpop.f32.mrf.mxu2 }
  0xb0   : > { %v695_v47 = vpop.f32.mrf.mxu0  ;;  %v829_v62 = vadd.f32 %v2073_v57, %v828_v46 }
  0xb1   : > { %v2060_v48 = vpop.f32.mrf.mxu1  ;;  %v696_v36 = vadd.f32 %v2087_v4, %v695_v47 }
  0xb6   : > { %v2062_v49 = vpop.f32.mrf.mxu3 }
  0xb7   : > { %v830_v50 = vpop.f32.mrf.mxu2 }
  0xb8   : > { %v698_v51 = vpop.f32.mrf.mxu0  ;;  %v831_v12 = vadd.f32 %v2073_v57, %v830_v50 }
  0xb9   : > { %v2064_v52 = vpop.f32.mrf.mxu1  ;;  %v699_v29 = vadd.f32 %v2087_v4, %v698_v51 }
  0xbe   : > { %v2066_v53 = vpop.f32.mrf.mxu3 }
  0xbf   : > { %v833_v54 = vpop.f32.mrf.mxu2 }
  0xc0   : > { %v700_v55 = vpop.f32.mrf.mxu0  ;;  %v834_v32 = vadd.f32 %v2073_v57, %v833_v54 }
  0xc1   : > { %v2068_v56 = vpop.f32.mrf.mxu1  ;;  %v701_v51 = vadd.f32 %v2087_v4, %v700_v55  ;;  %v729_v55 = vadd.f32 %v2087_v4, %v2066_v53 }
  0xc6   : > { %v2075_v58 = vpop.f32.mrf.mxu3 }
  0xc7   : > { %v835_v59 = vpop.f32.mrf.mxu2 }
  0xc8   : > { %v703_v60 = vpop.f32.mrf.mxu0 }
  0xc9   : > { %v808_v61 = vpop.f32.mrf.mxu1  ;;  %v704_v19 = vadd.f32 %v2087_v4, %v703_v60  ;;  %v836_v60 = vadd.f32 %v2073_v57, %v835_v59 }
  0xca   : > { %v809_v63 = vadd.f32 %v2073_v57, %v808_v61 }
  0xcc   : > { %v2082_v1 = vmul.f32 %v829_v62, %v809_v63 }
  0xce   : > { %v733_v2 = vpop.f32.mrf.mxu3 }
  0xcf   : > { %v920_v3 = vpop.f32.mrf.mxu2  ;;  %v734_v8 = vadd.f32 %v2087_v4, %v733_v2 }
  0xd0   : > { %v921_v5 = vadd.f32 %v1731_v0, %v920_v3  ;;  %v705_v6 = vpop.f32.mrf.mxu0  ;;  %v724_v0 = vadd.f32 %v2087_v4, %v2058_v45  ;;  %v726_v45 = vadd.f32 %v2087_v4, %v2062_v49 }
  0xd1   : > { %v810_v7 = vpop.f32.mrf.mxu1  ;;  %v706_v37 = vadd.f32 %v2087_v4, %v705_v6 }
  0xd2   : > { %v925_v9 = vrot.slane %v921_v5, 1  ;;  %v926_v10 = vrot.slane %v921_v5, 2  ;;  %v931_v11 = vmul.f32 0.25, %v921_v5  ;;  %v811_v13 = vadd.f32 %v2073_v57, %v810_v7 }
  0xd3   : > { %v927_v33 = vrot.slane %v921_v5, 3 }
  0xd4   : > { %v932_v14 = vmul.f32 0.25, %v925_v9  ;;  %v933_v15 = vmul.f32 0.25, %v926_v10  ;;  %v2092_v16 = vperm.slane %v931_v11, 0  ;;  %v2095_v18 = vmul.f32 %v831_v12, %v811_v13 }
  0xd5   : > { %v934_v41 = vmul.f32 0.25, %v927_v33  ;;  %v731_v11 = vadd.f32 %v2087_v4, %v2075_v58 }
  0xd6   : > { %v2098_v20 = vperm.slane %v933_v15, 0  ;;  %v735_v21 = vpop.f32.mrf.mxu3  ;;  %v1028_v22 = vmul.f32 %v2092_v16, %v734_v8  ;;  %v988_v24 = vmul.f32 %v2092_v16, %v694_v17  ;;  %v2102_v25 = vperm.slane %v932_v14, 0 }
  0xd7   : > { %v922_v23 = vpop.f32.mrf.mxu2  ;;  %v989_v40 = vmul.f32 %v2092_v16, %v696_v36  ;;  %v2122_v61 = vperm.slane %v934_v41, 0  ;;  %v736_v53 = vadd.f32 %v2087_v4, %v735_v21 }
  0xd8   : > { %v1036_v26 = vsel %vm963_vm4, %v1028_v22, 0.0  ;;  %v708_v27 = vpop.f32.mrf.mxu0  ;;  %v992_v28 = vmul.f32 %v2098_v20, %v704_v19  ;;  %v996_v31 = vsel %vm963_vm4, %v988_v24, 0.0  ;;  %v990_v38 = vmul.f32 %v2102_v25, %v699_v29 }
  0xd9   : > { %1037 = vadd.xlane.f32.xlu1 %v1036_v26  ;;  %v813_v30 = vpop.f32.mrf.mxu1  ;;  %997 = vadd.xlane.f32.xlu0 %v996_v31  ;;  %v993_v43 = vmul.f32 %v2098_v20, %v706_v37  ;;  %v999_v47 = vsel %vm963_vm4, %v989_v40, 0.0  ;;  %v991_v2 = vmul.f32 %v2102_v25, %v701_v51  ;;  %v959_v59 = vmul.f32 %v2098_v20, %v724_v0 }
  0xda   : > { %v814_v34 = vadd.f32 %v2073_v57, %v813_v30  ;;  %v1008_v35 = vsel %vm963_vm4, %v992_v28, 0.0  ;;  %v1002_v50 = vsel %vm963_vm4, %v990_v38, 0.0  ;;  %v961_v6 = vmul.f32 %v2122_v61, %v729_v55 }
  0xdb   : > { %1009 = vadd.xlane.f32.xlu2 %v1008_v35  ;;  %v1011_v63 = vsel %vm963_vm4, %v993_v43, 0.0  ;;  %v1005_v8 = vsel %vm963_vm4, %v991_v2, 0.0  ;;  %v976_v9 = vsel %vm963_vm4, %v959_v59, 0.0  ;;  %v960_v12 = vmul.f32 %v2098_v20, %v726_v45 }
  0xdc   : > { %v2114_v39 = vmul.f32 %v834_v32, %v814_v34  ;;  %v982_v10 = vsel %vm963_vm4, %v961_v6, 0.0  ;;  %v962_v13 = vmul.f32 %v2122_v61, %v731_v11  ;;  %v1029_v15 = vmul.f32 %v2092_v16, %v736_v53 }
  0xdd   : > { %v979_v49 = vsel %vm963_vm4, %v960_v12, 0.0  ;;  %v709_v21 = vadd.f32 %v2087_v4, %v708_v27 }
  0xde   : > { %v738_v42 = vpop.f32.mrf.mxu3  ;;  %v985_v22 = vsel %vm963_vm4, %v962_v13, 0.0  ;;  %v1039_v23 = vsel %vm963_vm4, %v1029_v15, 0.0 }
  0xdf   : > { %v994_v26 = vmul.f32 %v2122_v61, %v709_v21  ;;  %v739_v32 = vadd.f32 %v2087_v4, %v738_v42 }
  0xe0   : > { %v710_v46 = vpop.f32.mrf.mxu0 }
  0xe1   : > { %v815_v54 = vpop.f32.mrf.mxu1  ;;  %1003 = vadd.xlane.f32.xlu1 %v1002_v50  ;;  %1000 = vadd.xlane.f32.xlu0 %v999_v47  ;;  %v711_v17 = vadd.f32 %v2087_v4, %v710_v46  ;;  %v1014_v33 = vsel %vm963_vm4, %v994_v26, 0.0  ;;  %v1030_v37 = vmul.f32 %v2102_v25, %v739_v32  ;;  %v2198_v26 = vld [vmem:[%s2189_s20 + $0x20] sm:$0xff] }
  0xe2   : > { %v816_v62 = vadd.f32 %v2073_v57, %v815_v54 }
  0xe3   : > { %1012 = vadd.xlane.f32.xlu2 %v1011_v63  ;;  %v995_v24 = vmul.f32 %v2122_v61, %v711_v17  ;;  %v1042_v50 = vsel %vm963_vm4, %v1030_v37, 0.0 }
  0xe4   : > { %v2131_v3 = vmul.f32 %v836_v60, %v816_v62 }
  0xe5   : > { %v1017_v27 = vsel %vm963_vm4, %v995_v24, 0.0  ;;  %v2195_v24 = vstv %s1631_s15  ;;  %s1374_s15 = sshll.u32 %s1371_s30, 4  ;;  %s1375_s15 = int_to_ptr.hbm [resolvable:$true] %s1374_s15 }
  0xe6   : > { %v740_v5 = vpop.f32.mrf.mxu3  ;;  %s1785_s26 = sshra.s32 %s1375_s15, 4  ;;  %s1786_s26 = int_to_ptr.hbm [resolvable:$true] %s1785_s26 }
  0xe7   : > { %v741_v30 = vadd.f32 %v2087_v4, %v740_v5  ;;  %s1787_s25 = scalar_lea.hbm %s1786_s26, 4  ;;  %p1792_p3 = scmp.lt.s32.totalorder %s1786_s26, %s2385_s12 }
  0xe8   : > { %v713_v7 = vpop.f32.mrf.mxu0  ;;  %p1788_p0 = scmp.ne.s32.totalorder %s1786_s26, %s1787_s25 }
  0xe9   : > { %1006 = vadd.xlane.f32.xlu1 %v1005_v8  ;;  %977 = vadd.xlane.f32.xlu0 %v976_v9  ;;  %v714_v58 = vadd.f32 %v2087_v4, %v713_v7  ;;  %v1031_v36 = vmul.f32 %v2102_v25, %v741_v30  ;;  %v2204_v30 = vld [vmem:[%s2189_s20 + $0x8] sm:$0xff] }
  0xea   : > { %p1789_p1 = pnand %p1788_p0, %p1943_p5 }
  0xeb   : > { %983 = vadd.xlane.f32.xlu2 %v982_v10  ;;  %v955_v29 = vmul.f32 %v2092_v16, %v714_v58  ;;  %v1045_v42 = vsel %vm963_vm4, %v1031_v36, 0.0 }
  0xec   : > { %p1790_p2 = pneg %p1789_p1 }
  0xed   : > { %v964_v35 = vsel %vm963_vm4, %v955_v29, 0.0  ;;  %v1069_v29 = vstv %s1068_s17  ;;  %s1361_s17 = scalar_lea.sflag [#allocation3], %s489_s19 }
  0xee   : > { %v743_v14 = vpop.f32.mrf.mxu3 }
  0xef   : > { %v744_v34 = vadd.f32 %v2087_v4, %v743_v14 }
  0xf0   : > { %v715_v19 = vpop.f32.mrf.mxu0 }
  0xf1   : > { %980 = vadd.xlane.f32.xlu1 %v979_v49  ;;  %986 = vadd.xlane.f32.xlu0 %v985_v22  ;;  %v1032_v40 = vmul.f32 %v2098_v20, %v744_v34  ;;  %v716_v46 = vadd.f32 %v2087_v4, %v715_v19  ;;  %v2192_v22 = vld [vmem:[%s2189_s20] sm:$0xff] }
  0xf3   : > { %1040 = vadd.xlane.f32.xlu2 %v1039_v23  ;;  %v1048_v54 = vsel %vm963_vm4, %v1032_v40, 0.0  ;;  %v956_v60 = vmul.f32 %v2092_v16, %v716_v46  ;;  %v1122_v40 = vsub.f32 1.0, %v2192_v22 }
  0xf5   : > { %v967_v59 = vsel %vm963_vm4, %v956_v60, 0.0 }
  0xf6   : > { %v745_v28 = vpop.f32.mrf.mxu3 }
  0xf7   : > { %v746_v2 = vadd.f32 %v2087_v4, %v745_v28  ;;  %v2201_v28 = vld [vmem:[%s2189_s20 + $0x10] sm:$0xff] }
  0xf8   : > { %v718_v31 = vpop.f32.mrf.mxu0  ;;  %v1124_v60 = vsub.f32 1.0, %v2201_v28 }
  0xf9   : > { %1018 = vadd.xlane.f32.xlu1 %v1017_v27  ;;  %1015 = vadd.xlane.f32.xlu0 %v1014_v33  ;;  %v719_v41 = vadd.f32 %v2087_v4, %v718_v31  ;;  %v2207_v31 = vld [vmem:[%s2189_s20 + $0x28] sm:$0xff]  ;;  %v2210_v27 = vld [vmem:[%s2189_s20 + $0x18] sm:$0xff]  ;;  %v2212_v33 = vstv %s1632_s3  ;;  %s1791_s3 = scalar_lea.hbm %s2385_s12, 8 }
  0xfa   : > { %p1793_p4 = scmp.lt.s32.totalorder %s1791_s3, %s1787_s25 }
  0xfb   : > { %965 = vadd.xlane.f32.xlu2 %v964_v35  ;;  %v957_v47 = vmul.f32 %v2102_v25, %v719_v41 }
  0xfc   : > { %p1794_p7 = por %p1793_p4, %p1792_p3 }
  0xfd   : > { %v970_v55 = vsel %vm963_vm4, %v957_v47, 0.0 }
  0xfe   : > { %v748_v38 = vpop.f32.mrf.mxu3  ;;  %p1795_p8 = pnand %p1794_p7, %p1790_p2 }
  0xff   : > { %v749_v0 = vadd.f32 %v2087_v4, %v748_v38 }
 0x100   : > { %v720_v43 = vpop.f32.mrf.mxu0 }
 0x101   : > { %1046 = vadd.xlane.f32.xlu1 %v1045_v42  ;;  %v721_v51 = vadd.f32 %v2087_v4, %v720_v43  ;;  %1043 = vadd.xlane.f32.xlu0 %v1042_v50  ;;  %v1034_v16 = vmul.f32 %v2122_v61, %v749_v0  ;;  %v1126_v50 = vsub.f32 1.0, %v2198_v26 }
 0x103   : > { %1049 = vadd.xlane.f32.xlu2 %v1048_v54  ;;  %v958_v62 = vmul.f32 %v2102_v25, %v721_v51  ;;  %v1033_v25 = vmul.f32 %v2098_v20, %v746_v2  ;;  %v1054_v8 = vsel %vm963_vm4, %v1034_v16, 0.0 }
 0x105   : > { %v973_v6 = vsel %vm963_vm4, %v958_v62, 0.0  ;;  %v1051_v9 = vsel %vm963_vm4, %v1033_v25, 0.0 }
 0x106   : > { %v750_v63 = vpop.f32.mrf.mxu3 }
 0x107   : > { %v751_v5 = vadd.f32 %v2087_v4, %v750_v63 }
 0x109   : > { %971 = vadd.xlane.f32.xlu1 %v970_v55  ;;  %968 = vadd.xlane.f32.xlu0 %v967_v59  ;;  %v1035_v7 = vmul.f32 %v2122_v61, %v751_v5  ;;  %v1130_v55 = vmul.f32 -1e+30, %v1122_v40 }
 0x10b   : > { %974 = vadd.xlane.f32.xlu2 %v973_v6  ;;  %v1057_v45 = vsel %vm963_vm4, %v1035_v7, 0.0  ;;  %v2230_v6 = vmul.f32 -1e+30, %v1126_v50  ;;  %v2233_v7 = vld [vmem:[%s2189_s20 + $0x38] sm:$0xff] }
 0x111   : > { %1055 = vadd.xlane.f32.xlu1 %v1054_v8  ;;  %1052 = vadd.xlane.f32.xlu0 %v1051_v9  ;;  %v2236_v8 = vld [vmem:[%s2189_s20 + $0x30] sm:$0xff] }
 0x113   : > { %1058 = vadd.xlane.f32.xlu2 %v1057_v45 }
 0x14c   : > { %v1038_v4 = vpop.xlane.xlu1 %1037  ;;  %v998_v53 = vpop.xlane.xlu0 %997 }
 0x14d   : > { %v1020_v23 = vmul.f32 %v998_v53, %v2192_v22  ;;  %v1060_v34 = vmul.f32 %v1038_v4, %v2192_v22 }
 0x14e   : > { %v1010_v10 = vpop.xlane.xlu2 %1009 }
 0x14f   : > { %v1080_v36 = vmul.f32 %v2195_v24, %v1020_v23  ;;  %v1024_v37 = vmul.f32 %v1010_v10, %v2198_v26  ;;  %v1098_v62 = vmul.f32 %v2212_v33, %v1060_v34 }
 0x151   : > { %v1084_v63 = vmul.f32 %v2195_v24, %v1024_v37 }
 0x154   : > { %v1004_v11 = vpop.xlane.xlu1 %1003  ;;  %v1001_v12 = vpop.xlane.xlu0 %1000 }
 0x155   : > { %v1022_v38 = vmul.f32 %v1004_v11, %v2201_v28  ;;  %v1021_v43 = vmul.f32 %v1001_v12, %v2204_v30  ;;  %v1132_v11 = vmul.f32 -1e+30, %v1124_v60 }
 0x156   : > { %v1013_v13 = vpop.xlane.xlu2 %1012 }
 0x157   : > { %v1025_v42 = vmul.f32 %v1013_v13, %v2207_v31  ;;  %v1082_v0 = vmul.f32 %v2195_v24, %v1022_v38  ;;  %v1081_v2 = vmul.f32 %v2195_v24, %v1021_v43  ;;  %v1128_v43 = vsub.f32 1.0, %v2236_v8 }
 0x159   : > { %v1085_v59 = vmul.f32 %v2195_v24, %v1025_v42 }
 0x15c   : > { %v1007_v14 = vpop.xlane.xlu1 %1006  ;;  %v978_v20 = vpop.xlane.xlu0 %977 }
 0x15d   : > { %v1023_v46 = vmul.f32 %v1007_v14, %v2210_v27  ;;  %v1074_v54 = vmul.f32 %v1069_v29, %v978_v20 }
 0x15e   : > { %v984_v15 = vpop.xlane.xlu2 %983 }
 0x15f   : > { %v1083_v5 = vmul.f32 %v2195_v24, %v1023_v46  ;;  %v1092_v16 = vadd.f32 %v1084_v63, %v1074_v54  ;;  %v1076_v25 = vmul.f32 %v1069_v29, %v984_v15  ;;  %v1123_v15 = vsub.f32 1.0, %v2204_v30 }
 0x161   : > { %v1131_v54 = vmul.f32 -1e+30, %v1123_v15 }
 0x164   : > { %v981_v61 = vpop.xlane.xlu1 %980  ;;  %v987_v17 = vpop.xlane.xlu0 %986 }
 0x165   : > { %v1075_v4 = vmul.f32 %v1069_v29, %v981_v61  ;;  %v1077_v13 = vmul.f32 %v1069_v29, %v987_v17  ;;  %v1125_v61 = vsub.f32 1.0, %v2210_v27 }
 0x166   : > { %v1041_v19 = vpop.xlane.xlu2 %1040 }
 0x167   : > { %v1061_v53 = vmul.f32 %v1041_v19, %v2204_v30 }
 0x16c   : > { %v1019_v49 = vpop.xlane.xlu1 %1018  ;;  %v1016_v21 = vpop.xlane.xlu0 %1015 }
 0x16d   : > { %v1027_v23 = vmul.f32 %v1019_v49, %v2233_v7  ;;  %v1093_v49 = vadd.f32 %v1085_v59, %v1075_v4  ;;  %v1136_v59 = vmul.f32 -1e+30, %v1128_v43 }
 0x16e   : > { %v966_v58 = vpop.xlane.xlu2 %965 }
 0x16f   : > { %v1070_v32 = vmul.f32 %v1069_v29, %v966_v58  ;;  %v1087_v50 = vmul.f32 %v2195_v24, %v1027_v23 }
 0x171   : > { %v1088_v47 = vadd.f32 %v1080_v36, %v1070_v32  ;;  %v1026_v32 = vmul.f32 %v1016_v21, %v2236_v8 }
 0x173   : > { %v1106_v9 = vadd.f32 %v1098_v62, %v1088_v47  ;;  %v1133_v62 = vmul.f32 -1e+30, %v1125_v61 }
 0x174   : > { %v1047_v35 = vpop.xlane.xlu1 %1046  ;;  %v1044_v41 = vpop.xlane.xlu0 %1043 }
 0x175   : > { %v1062_v45 = vmul.f32 %v1044_v41, %v2201_v28  ;;  %v1063_v14 = vmul.f32 %v1047_v35, %v2210_v27  ;;  %v1114_v36 = vmul.f32 %v1106_v9, %v2192_v22  ;;  %v1099_v35 = vmul.f32 %v2212_v33, %v1061_v53 }
 0x176   : > { %v1050_v51 = vpop.xlane.xlu2 %1049 }
 0x177   : > { %v1064_v10 = vmul.f32 %v1050_v51, %v2198_v26  ;;  %v1100_v37 = vmul.f32 %v2212_v33, %v1062_v45  ;;  %v1101_v21 = vmul.f32 %v2212_v33, %v1063_v14  ;;  %v1086_v51 = vmul.f32 %v2195_v24, %v1026_v32 }
 0x178   : > { %v2254_v60 = vadd.f32 %v1130_v55, %v1114_v36  ;;  %v1127_v45 = vsub.f32 1.0, %v2207_v31  ;;  %v1129_v55 = vsub.f32 1.0, %v2233_v7 }
 0x179   : > { %v1102_v40 = vmul.f32 %v2212_v33, %v1064_v10  ;;  %v1095_v10 = vadd.f32 %v1087_v50, %v1077_v13 }
 0x17a   : > { %v1147_v15 = vsel %vm1146_vm5, %v2254_v60, -inf  ;;  %v1137_v43 = vmul.f32 -1e+30, %v1129_v55 }
 0x17c   : > { %v972_v12 = vpop.xlane.xlu1 %971  ;;  %v969_v58 = vpop.xlane.xlu0 %968 }
 0x17d   : > { %v1072_v20 = vmul.f32 %v1069_v29, %v972_v12  ;;  %v1071_v34 = vmul.f32 %v1069_v29, %v969_v58  ;;  %v1094_v12 = vadd.f32 %v1086_v51, %v1076_v25 }
 0x17e   : > { %v975_v19 = vpop.xlane.xlu2 %974 }
 0x17f   : > { %v1090_v38 = vadd.f32 %v1082_v0, %v1072_v20  ;;  %v1073_v17 = vmul.f32 %v1069_v29, %v975_v19  ;;  %v1089_v41 = vadd.f32 %v1081_v2, %v1071_v34  ;;  %v1110_v0 = vadd.f32 %v1102_v40, %v1092_v16 }
 0x181   : > { %v1108_v42 = vadd.f32 %v1100_v37, %v1090_v38  ;;  %v1091_v46 = vadd.f32 %v1083_v5, %v1073_v17  ;;  %v1107_v47 = vadd.f32 %v1099_v35, %v1089_v41  ;;  %v1118_v32 = vmul.f32 %v1110_v0, %v2198_v26 }
 0x182   : > { %v1135_v17 = vmul.f32 -1e+30, %v1127_v45 }
 0x183   : > { %v1116_v29 = vmul.f32 %v1108_v42, %v2201_v28  ;;  %v1109_v63 = vadd.f32 %v1101_v21, %v1091_v46  ;;  %v1115_v2 = vmul.f32 %v1107_v47, %v2204_v30  ;;  %v1142_v42 = vadd.f32 %v2230_v6, %v1118_v32 }
 0x184   : > { %v1056_v9 = vpop.xlane.xlu1 %1055  ;;  %v1053_v53 = vpop.xlane.xlu0 %1052 }
 0x185   : > { %v2259_v5 = vadd.f32 %v1132_v11, %v1116_v29  ;;  %v1117_v4 = vmul.f32 %v1109_v63, %v2210_v27  ;;  %v1066_v24 = vmul.f32 %v1056_v9, %v2236_v8  ;;  %v1139_v14 = vadd.f32 %v1131_v54, %v1115_v2 }
 0x186   : > { %v1065_v16 = vmul.f32 %v1053_v53, %v2207_v31  ;;  %v1059_v20 = vpop.xlane.xlu2 %1058  ;;  %v1840_v29 = vmov 0   ;;  %v1165_v0 = vsel %vm1146_vm5, %v1142_v42, -inf }
 0x187   : > { %v1141_v58 = vadd.f32 %v1133_v62, %v1117_v4  ;;  %v1104_v11 = vmul.f32 %v2212_v33, %v1066_v24  ;;  %v1067_v23 = vmul.f32 %v1059_v20, %v2233_v7  ;;  %v1156_v34 = vsel %vm1146_vm5, %v2259_v5, -inf  ;;  %1727 = vset.pattern.permute.xlu1 %v1840_v29  ;;  %1726 = vset.pattern.permute.xlu0 %v1840_v29 }
 0x188   : > { %v1148_v13 = vsel %vm1146_vm5, %v1139_v14, -inf  ;;  %v1103_v25 = vmul.f32 %v2212_v33, %v1065_v16  ;;  %1728 = vset.pattern.permute.xlu2 %v1840_v29 }
 0x189   : > { %v1149_v61 = vmax.f32 %v1147_v15, %v1148_v13  ;;  %v1157_v19 = vsel %vm1146_vm5, %v1141_v58, -inf  ;;  %v1112_v36 = vadd.f32 %v1104_v11, %v1094_v12  ;;  %v1105_v37 = vmul.f32 %v2212_v33, %v1067_v23 }
 0x18a   : > { %v1158_v38 = vmax.f32 %v1156_v34, %v1157_v19  ;;  %v1111_v35 = vadd.f32 %v1103_v25, %v1093_v49 }
 0x18b   : > { %v1150_v40 = vrot.slane %v1149_v61, 4  ;;  %v1120_v41 = vmul.f32 %v1112_v36, %v2236_v8  ;;  %v1113_v21 = vadd.f32 %v1105_v37, %v1095_v10 }
 0x18c   : > { %v1159_v46 = vrot.slane %v1158_v38, 4  ;;  %v1119_v50 = vmul.f32 %v1111_v35, %v2207_v31 }
 0x18d   : > { %v1151_v51 = vmax.f32 %v1149_v61, %v1150_v40  ;;  %v1144_v54 = vadd.f32 %v1136_v59, %v1120_v41  ;;  %v1121_v47 = vmul.f32 %v1113_v21, %v2233_v7 }
 0x18e   : > { %v1160_v33 = vmax.f32 %v1158_v38, %v1159_v46  ;;  %v1143_v62 = vadd.f32 %v1135_v17, %v1119_v50 }
 0x18f   : > { %v1152_v49 = vrot.slane %v1151_v51, 2  ;;  %v1145_v63 = vadd.f32 %v1137_v43, %v1121_v47  ;;  %v1174_v45 = vsel %vm1146_vm5, %v1144_v54, -inf }
 0x190   : > { %v1161_v2 = vrot.slane %v1160_v33, 2  ;;  %v1166_v6 = vsel %vm1146_vm5, %v1143_v62, -inf }
 0x191   : > { %v1153_v9 = vmax.f32 %v1151_v51, %v1152_v49  ;;  %v1167_v4 = vmax.f32 %v1165_v0, %v1166_v6  ;;  %v1175_v59 = vsel %vm1146_vm5, %v1145_v63, -inf }
 0x192   : > { %v1162_v24 = vmax.f32 %v1160_v33, %v1161_v2  ;;  %v1176_v53 = vmax.f32 %v1174_v45, %v1175_v59 }
 0x193   : > { %v1154_v55 = vrot.slane %v1153_v9, 1  ;;  %v1168_v10 = vrot.slane %v1167_v4, 4 }
 0x194   : > { %v1163_v12 = vrot.slane %v1162_v24, 1  ;;  %v1177_v16 = vrot.slane %v1176_v53, 4 }
 0x195   : > { %v1155_v20 = vmax.f32 %v1153_v9, %v1154_v55  ;;  %v1169_v15 = vmax.f32 %v1167_v4, %v1168_v10 }
 0x196   : > { %v1164_v11 = vmax.f32 %v1162_v24, %v1163_v12  ;;  %v1178_v23 = vmax.f32 %v1176_v53, %v1177_v16 }
 0x197   : > { %v1183_v32 = vsub.f32 %v2254_v60, %v1155_v20  ;;  %v1184_v34 = vsub.f32 %v1139_v14, %v1155_v20  ;;  %v1170_v13 = vrot.slane %v1169_v15, 2 }
 0x198   : > { %v1186_v25 = vsub.f32 %v1141_v58, %v1164_v11  ;;  %v1179_v61 = vrot.slane %v1178_v23, 2  ;;  %v1185_v19 = vsub.f32 %v2259_v5, %v1164_v11 }
 0x199   : > { %v1191_v36 = vmul.f32 1.442695, %v1183_v32  ;;  %v1193_v37 = vmul.f32 1.442695, %v1184_v34  ;;  %v1171_v38 = vmax.f32 %v1169_v15, %v1170_v13 }
 0x19a   : > { %v1197_v17 = vmul.f32 1.442695, %v1186_v25  ;;  %v1180_v35 = vmax.f32 %v1178_v23, %v1179_v61  ;;  %v1195_v40 = vmul.f32 1.442695, %v1185_v19 }
 0x19b   : > { %1732 = vpow2.f32 %v1191_v36  ;;  %v1172_v41 = vrot.slane %v1171_v38, 1 }
 0x19c   : > { %1734 = vpow2.f32 %v1193_v37  ;;  %v1181_v43 = vrot.slane %v1180_v35, 1 }
 0x19d   : > { %1736 = vpow2.f32 %v1197_v17  ;;  %v1173_v21 = vmax.f32 %v1171_v38, %v1172_v41 }
 0x19e   : > { %v1182_v46 = vmax.f32 %v1180_v35, %v1181_v43  ;;  %1738 = vpow2.f32 %v1195_v40 }
 0x19f   : > { %v1188_v60 = vsub.f32 %v1143_v62, %v1173_v21  ;;  %v1187_v14 = vsub.f32 %v1142_v42, %v1173_v21 }
 0x1a0   : > { %v1189_v58 = vsub.f32 %v1144_v54, %v1182_v46  ;;  %v1190_v50 = vsub.f32 %v1145_v63, %v1182_v46 }
 0x1a1   : > { %v1733_v51 = vpop.eup %1732  ;;  %v1201_v5 = vmul.f32 1.442695, %v1188_v60  ;;  %v1199_v47 = vmul.f32 1.442695, %v1187_v14 }
 0x1a2   : > { %v1735_v29 = vpop.eup %1734  ;;  %v1203_v33 = vmul.f32 1.442695, %v1189_v58  ;;  %v1205_v49 = vmul.f32 1.442695, %v1190_v50  ;;  %v1207_v0 = vsel %vm1146_vm5, %v1733_v51, 0.0 }
 0x1a3   : > { %v1737_v2 = vpop.eup %1736  ;;  %v1208_v6 = vsel %vm1146_vm5, %v1735_v29, 0.0  ;;  %1740 = vpow2.f32 %v1201_v5 }
 0x1a4   : > { %v1739_v9 = vpop.eup %1738  ;;  %v1217_v45 = vsel %vm1146_vm5, %v1737_v2, 0.0  ;;  %1742 = vpow2.f32 %v1203_v33  ;;  %v1209_v62 = vadd.f32 %v1208_v6, %v1207_v0 }
 0x1a5   : > { %1744 = vpow2.f32 %v1205_v49  ;;  %v1216_v42 = vsel %vm1146_vm5, %v1739_v9, 0.0 }
 0x1a6   : > { %v1210_v54 = vrot.slane %v1209_v62, 4  ;;  %v1218_v63 = vadd.f32 %v1217_v45, %v1216_v42  ;;  %1746 = vpow2.f32 %v1199_v47 }
 0x1a8   : > { %v1211_v4 = vadd.f32 %v1210_v54, %v1209_v62  ;;  %v1219_v59 = vrot.slane %v1218_v63, 4 }
 0x1a9   : > { %v1741_v24 = vpop.eup %1740 }
 0x1aa   : > { %v1743_v53 = vpop.eup %1742  ;;  %v1212_v55 = vrot.slane %v1211_v4, 2  ;;  %v1220_v10 = vadd.f32 %v1219_v59, %v1218_v63  ;;  %v1226_v16 = vsel %vm1146_vm5, %v1741_v24, 0.0 }
 0x1ab   : > { %v1745_v12 = vpop.eup %1744  ;;  %v1234_v20 = vsel %vm1146_vm5, %v1743_v53, 0.0 }
 0x1ac   : > { %v1747_v15 = vpop.eup %1746  ;;  %v1235_v11 = vsel %vm1146_vm5, %v1745_v12, 0.0  ;;  %v1213_v23 = vadd.f32 %v1212_v55, %v1211_v4  ;;  %v1221_v32 = vrot.slane %v1220_v10, 2 }
 0x1ad   : > { %v1225_v34 = vsel %vm1146_vm5, %v1747_v15, 0.0  ;;  %v1236_v13 = vadd.f32 %v1235_v11, %v1234_v20 }
 0x1ae   : > { %v1214_v25 = vrot.slane %v1213_v23, 1  ;;  %v1222_v61 = vadd.f32 %v1221_v32, %v1220_v10  ;;  %v1227_v19 = vadd.f32 %v1226_v16, %v1225_v34 }
 0x1af   : > { %v1237_v36 = vrot.slane %v1236_v13, 4 }
 0x1b0   : > { %v1215_v37 = vadd.f32 %v1214_v25, %v1213_v23  ;;  %v1223_v38 = vrot.slane %v1222_v61, 1  ;;  %v1228_v17 = vrot.slane %v1227_v19, 4 }
 0x1b1   : > { %v1238_v35 = vadd.f32 %v1237_v36, %v1236_v13 }
 0x1b2   : > { %1748 = vrcp.f32 %v1215_v37  ;;  %v1224_v40 = vadd.f32 %v1223_v38, %v1222_v61  ;;  %v1229_v41 = vadd.f32 %v1228_v17, %v1227_v19  ;;  %v799_v61 = vadd.f32 %v2073_v57, %v2056_v44 }
 0x1b3   : > { %v1239_v43 = vrot.slane %v1238_v35, 2 }
 0x1b4   : > { %1750 = vrcp.f32 %v1224_v40  ;;  %v1230_v21 = vrot.slane %v1229_v41, 2 }
 0x1b5   : > { %v1240_v46 = vadd.f32 %v1239_v43, %v1238_v35 }
 0x1b6   : > { %v1231_v60 = vadd.f32 %v1230_v21, %v1229_v41 }
 0x1b7   : > { %v1241_v14 = vrot.slane %v1240_v46, 1 }
 0x1b8   : > { %v1749_v58 = vpop.eup %1748  ;;  %v1232_v50 = vrot.slane %v1231_v60, 1 }
 0x1b9   : > { %v1248_v5 = vmul.f32 %v1749_v58, %v1735_v29  ;;  %v1247_v47 = vmul.f32 %v1749_v58, %v1733_v51  ;;  %v1242_v33 = vadd.f32 %v1241_v14, %v1240_v46 }
 0x1ba   : > { %v1751_v49 = vpop.eup %1750  ;;  %v1233_v0 = vadd.f32 %v1232_v50, %v1231_v60 }
 0x1bb   : > { %v1256_v6 = vmul.f32 %v1248_v5, %v2204_v30  ;;  %v1255_v45 = vmul.f32 %v1247_v47, %v2192_v22  ;;  %v1249_v62 = vmul.f32 %v1751_v49, %v1739_v9  ;;  %v1250_v54 = vmul.f32 %v1751_v49, %v1737_v2  ;;  %v818_v2 = vpop.f32.mrf.mxu1 }
 0x1bc   : > { %1752 = vrcp.f32 %v1233_v0  ;;  %v819_v19 = vadd.f32 %v2073_v57, %v818_v2 }
 0x1bd   : > { %1278 = vperm.xlu1 %1727, %v1256_v6   ;;  %1273 = vperm.xlu0 %1726, %v1255_v45   ;;  %v1257_v42 = vmul.f32 %v1249_v62, %v2201_v28  ;;  %1754 = vrcp.f32 %v1242_v33  ;;  %v1258_v55 = vmul.f32 %v1250_v54, %v2210_v27  ;;  %v804_v27 = vadd.f32 %v2073_v57, %v2064_v52 }
 0x1be   : > { %v1263_v35 = vmul.f32 %v819_v19, %v799_v61 }
 0x1bf   : > { %1283 = vperm.xlu2 %1728, %v1257_v42  }
 0x1c2   : > { %v1753_v63 = vpop.eup %1752 }
 0x1c3   : > { %v1755_v4 = vpop.eup %1754  ;;  %v1251_v29 = vmul.f32 %v1753_v63, %v1747_v15  ;;  %v1252_v9 = vmul.f32 %v1753_v63, %v1741_v24  ;;  %v820_v16 = vpop.f32.mrf.mxu1 }
 0x1c4   : > { %v1254_v51 = vmul.f32 %v1755_v4, %v1745_v12  ;;  %v1253_v22 = vmul.f32 %v1755_v4, %v1743_v53  ;;  %v806_v53 = vadd.f32 %v2073_v57, %v2068_v56  ;;  %v801_v56 = vadd.f32 %v2073_v57, %v2060_v48 }
 0x1c5   : > { %v1259_v59 = vmul.f32 %v1251_v29, %v2198_v26  ;;  %v1260_v10 = vmul.f32 %v1252_v9, %v2207_v31  ;;  %v821_v36 = vadd.f32 %v2073_v57, %v820_v16 }
 0x1c6   : > { %v1262_v30 = vmul.f32 %v1254_v51, %v2233_v7  ;;  %v1261_v28 = vmul.f32 %v1253_v22, %v2236_v8 }
 0x1c7   : > { %1293 = vperm.xlu1 %1727, %v1259_v59   ;;  %1288 = vperm.xlu2 %1728, %v1258_v55   ;;  %v1264_v17 = vmul.f32 %v821_v36, %v801_v56 }
 0x1c8   : > { %1308 = vperm.xlu0 %1726, %v1262_v30  }
 0x1cb   : > { %v823_v12 = vpop.f32.mrf.mxu1 }
 0x1cc   : > { %v824_v7 = vadd.f32 %v2073_v57, %v823_v12 }
 0x1ce   : > { %v1265_v24 = vmul.f32 %v824_v7, %v804_v27 }
 0x1cf   : > { %1303 = vperm.xlu1 %1727, %v1261_v28   ;;  %1298 = vperm.xlu2 %1728, %v1260_v10  }
 0x1d3   : > { %v825_v20 = vpop.f32.mrf.mxu1 }
 0x1d4   : > { %v826_v8 = vadd.f32 %v2073_v57, %v825_v20 }
 0x1d6   : > { %v1266_v15 = vmul.f32 %v826_v8, %v806_v53 }
 0x219   : > { %v1284_v26 = vpop.permute.xlu2 %1283 }
 0x21a   : > { %v1313_v31 = vmul.f32 %v1284_v26, %v1265_v24 }
 0x21c   : > { %v1328_v32 = vsel %vm963_vm4, %v1313_v31, 0.0 }
 0x221   : > { %v1289_v11 = vpop.permute.xlu2 %1288 }
 0x222   : > { %v1314_v23 = vmul.f32 %v1289_v11, %v1266_v15 }
 0x224   : > { %v1329_v34 = vsel %vm963_vm4, %v1314_v23, 0.0 }
 0x225   : > { %v1330_v13 = vadd.f32 %v1329_v34, %v1328_v32 }
 0x227   : > { %v1331_v52 = vrot.slane %v1330_v13, 4 }
 0x229   : > { %v1332_v25 = vadd.f32 %v1331_v52, %v1330_v13  ;;  %v1299_v14 = vpop.permute.xlu2 %1298 }
 0x22a   : > { %v1316_v5 = vmul.f32 %v1299_v14, %v2095_v18 }
 0x22b   : > { %v1333_v37 = vrot.slane %v1332_v25, 2 }
 0x22c   : > { %v1338_v6 = vsel %vm963_vm4, %v1316_v5, 0.0 }
 0x22d   : > { %v1334_v38 = vadd.f32 %v1333_v37, %v1332_v25 }
 0x22f   : > { %v1335_v40 = vrot.slane %v1334_v38, 1  ;;  %v1279_v41 = vpop.permute.xlu1 %1278  ;;  %v1274_v43 = vpop.permute.xlu0 %1273 }
 0x230   : > { %v1312_v21 = vmul.f32 %v1279_v41, %v1264_v17  ;;  %v1311_v44 = vmul.f32 %v1274_v43, %v1263_v35 }
 0x231   : > { %v1336_v46 = vadd.f32 %v1335_v40, %v1334_v38 }
 0x232   : > { %v1320_v48 = vsel %vm963_vm4, %v1312_v21, 0.0  ;;  %v1319_v60 = vsel %vm963_vm4, %v1311_v44, 0.0 }
 0x233   : > { %1357 = vst.msk [vmem:[%s2321_s16 + $0x1] sm:$0x1] %vm1355_vm6, %v1336_v46  ;;  %v1321_v57 = vadd.f32 %v1320_v48, %v1319_v60 }
 0x235   : > { %v1322_v58 = vrot.slane %v1321_v57, 4 }
 0x237   : > { %v1323_v50 = vadd.f32 %v1322_v58, %v1321_v57 }
 0x239   : > { %v1324_v47 = vrot.slane %v1323_v50, 2  ;;  %v1294_v33 = vpop.permute.xlu1 %1293 }
 0x23a   : > { %v1315_v49 = vmul.f32 %v1294_v33, %v2082_v1  ;;  %v1309_v54 = vpop.permute.xlu0 %1308 }
 0x23b   : > { %v1325_v0 = vadd.f32 %v1324_v47, %v1323_v50  ;;  %v1318_v29 = vmul.f32 %v1309_v54, %v2131_v3 }
 0x23c   : > { %v1337_v45 = vsel %vm963_vm4, %v1315_v49, 0.0 }
 0x23d   : > { %v1326_v62 = vrot.slane %v1325_v0, 1  ;;  %v1339_v42 = vadd.f32 %v1338_v6, %v1337_v45  ;;  %v1347_v55 = vsel %vm963_vm4, %v1318_v29, 0.0 }
 0x23f   : > { %v1327_v63 = vadd.f32 %v1326_v62, %v1325_v0  ;;  %v1340_v4 = vrot.slane %v1339_v42, 4 }
 0x241   : > { %1356 = vst.msk [vmem:[%s2321_s16] sm:$0x1] %vm1355_vm6, %v1327_v63  ;;  %v1341_v18 = vadd.f32 %v1340_v4, %v1339_v42  ;;  %v1304_v51 = vpop.permute.xlu1 %1303 }
 0x242   : > { %v1317_v1 = vmul.f32 %v1304_v51, %v2114_v39 }
 0x243   : > { %v1342_v59 = vrot.slane %v1341_v18, 2 }
 0x244   : > { %v1346_v30 = vsel %vm963_vm4, %v1317_v1, 0.0 }
 0x245   : > { %v1343_v22 = vadd.f32 %v1342_v59, %v1341_v18  ;;  %v1348_v9 = vadd.f32 %v1347_v55, %v1346_v30 }
 0x247   : > { %v1344_v28 = vrot.slane %v1343_v22, 1  ;;  %v1349_v10 = vrot.slane %v1348_v9, 4 }
 0x249   : > { %v1345_v2 = vadd.f32 %v1344_v28, %v1343_v22  ;;  %v1350_v3 = vadd.f32 %v1349_v10, %v1348_v9 }
 0x24b   : > { %1358 = vst.msk [vmem:[%s2321_s16 + $0x2] sm:$0x1] %vm1355_vm6, %v1345_v2  ;;  %v1351_v39 = vrot.slane %v1350_v3, 2 }
 0x24d   : > { %v1352_v16 = vadd.f32 %v1351_v39, %v1350_v3 }
 0x24f   : > { %v1353_v12 = vrot.slane %v1352_v16, 1 }
 0x251   : > { %v1354_v20 = vadd.f32 %v1353_v12, %v1352_v16 }
 0x253   : > { %1359 = vst.msk [vmem:[%s2321_s16 + $0x3] sm:$0x1] %vm1355_vm6, %v1354_v20 }
 0x254   : > { %1798 = shalt.err (!%p1795_p8)
}
 0x255   : > { %s1841_s19 = smov 16   ;;  %s1842_s16 = smov 1  }
 0x256   : > { %1677 = dma.vmem_to_hbm [thread:$0]  (%p1943_p5), %s1373_s28, 64, %s1375_s15, %s1361_s17, %s1841_s19, %s1841_s19, %s1842_s16  }
 0x257 PF: > { %p1689_p9 = scmp.ge.s32.totalorder %s1837_s24, 2  ;;  %s1389_s23 = sand.u32 1, %s1825_s21  }
 0x258   : > { %s1390_s30 = scalar_lea.sflag [#allocation3], %s1389_s23 }
 0x259   : > { %p1684_p10 = pnand %p1689_p9, %p1947_p6 }
 0x25b   : > { %p1685_p11 = pneg %p1684_p10 }
 0x25d   : > { %1820 = dma.done.wait (%p1685_p11), %s1390_s30, 64  }
 0x25e   : > { %1822 = vsyncadd (%p1685_p11), %s1390_s30, 4294967232  ;;  %s2395_s26 = sld [smem:[#allocation8_spill]]  ;;  %p23_p12 = scmp.ge.s32.totalorder %s1931_s27, 4  }
 0x25f   : > { %s2396_s23 = sld [smem:[#allocation9_spill]]  ;;  %s2397_s21 = smov %s1829_s22 }
 0x260   : > { %s2399_s24 = smov %s1931_s27  ;;  %25 = sbr.rel (!%p23_p12) target bundleno = 7 (0x7), region = 120 }
 0x264   : > { %s2398_s22 = smov %s2395_s26 }
 0x265   :  { %1396 = vsyncpa [#allocation3], 1 }
 0x266   :  { %1398 = vsyncpa [#allocation3 + $0x1], 1 }
 0x267   :  { %1399 = vsyncpa [#allocation4], 1 }
 0x268   :  { %1401 = vsyncpa [#allocation4 + $0x1], 1 }

</bundles_post_ra>
